<compile_context>
chip_gen: v5e
topology: v5e:2x2
jax: 0.10.0
libtpu: 0.0.40
codegen_flags: <defaults>
</compile_context>

<pallas_src>
import jax
import jax.numpy as jnp
from jax.experimental import pallas as pl
from jax.experimental.pallas import tpu as pltpu


def _round_up(x, m):
    return ((x + m - 1) // m) * m


def _bahdanau_kernel(q_ref, k_ref, wa_ref, ua_ref, b_ref, va_ref,
                     ctx_ref, attn_ref):
    # q_ref   : (Bblk, Dq)       flattened decoder state (L * dec_hidden)
    # k_ref   : (Bblk, S, De)    encoder outputs
    # wa_ref  : (Dq, Ddp)        Wa weight, pre-transposed, Dd padded to 128-mult
    # ua_ref  : (De, Ddp)        Ua weight, pre-transposed, Dd padded
    # b_ref   : (1, Ddp)         fused bias (Wa.bias + Ua.bias), zero-padded
    # va_ref  : (1, Ddp)         Va weight row (Va.bias dropped), zero-padded
    # ctx_ref : (Bblk, De)       context output (lane/sublane dense)
    # attn_ref: (Bblk, S)        attention-weights output (lane/sublane dense)
    bblk, s_len, d_enc = k_ref.shape
    d_dec = wa_ref.shape[1]

    q = q_ref[...]
    k = k_ref[...]

    # Wa(q): one (Bblk, Dq) @ (Dq, Ddp) GEMM per block.
    q_proj = jnp.dot(q, wa_ref[...],
                     preferred_element_type=jnp.float32)              # (Bblk, Ddp)

    # Ua(k): fold the batch block into the GEMM's M dimension.
    k2 = k.reshape(bblk * s_len, d_enc)
    k_proj = jnp.dot(k2, ua_ref[...],
                     preferred_element_type=jnp.float32)              # (Bblk*S, Ddp)
    k_proj = k_proj.reshape(bblk, s_len, d_dec)

    # Additive attention energies: Va . tanh(Wa q + Ua k + b)   (all f32)
    h = jnp.tanh(k_proj + q_proj[:, None, :] + b_ref[...])            # (Bblk, S, Ddp)
    scores = jnp.sum(h * va_ref[...], axis=-1)                        # (Bblk, S)

    # Softmax over the encoder axis (lane dim), max-subtracted, f32.
    m = jnp.max(scores, axis=-1, keepdims=True)
    e = jnp.exp(scores - m)
    denom = jnp.sum(e, axis=-1, keepdims=True)
    w = e * pl.reciprocal(denom, approx=True)                         # (Bblk, S)

    # context = sum_S w * k : VPU multiply + sublane reduction, f32 accumulate.
    kf = k.astype(jnp.float32)
    ctx = jnp.sum(w[:, :, None] * kf, axis=1)                         # (Bblk, De)

    attn_ref[...] = w.astype(attn_ref.dtype)
    ctx_ref[...] = ctx.astype(ctx_ref.dtype)


def bahdanau_attention(query, keys, wa_w, wa_b, ua_w, ua_b, va_w, va_b,
                       *, block_b=256, mxu_dtype=None):
    """Mirrors BahdanauAttention.forward.

    query: (L, B, Hd)    decoder hidden states (dec_num_layers, batch, dec_hidden)
    keys : (A, C, B, He) encoder outputs; module consumes reshape(-1, B, He).transpose(0, 1)
    wa_w : (Dd, L*Hd), wa_b: (Dd,)   -- nn.Linear(L*Hd, Dd)
    ua_w : (Dd, He),   ua_b: (Dd,)   -- nn.Linear(He, Dd)
    va_w : (1, Dd),    va_b: (1,)    -- nn.Linear(Dd, 1)
    mxu_dtype: optional (e.g. jnp.bfloat16 on v6e/v7x) dtype for the MXU
               operands (q, keys, Wa^T, Ua^T); elementwise math stays f32.
    Returns (context (B, 1, He), weights (B, 1, S)).
    """
    out_dtype = query.dtype

    # --- module's own layout preprocessing (pure reshapes, outside the kernel) ---
    q = jnp.transpose(query, (1, 0, 2))
    B = q.shape[0]
    q = q.reshape(B, q.shape[1] * q.shape[2])                          # (B, Dq)
    k = keys.reshape(-1, keys.shape[2], keys.shape[3])
    k = jnp.transpose(k, (1, 0, 2))                                    # (B, S, De)

    Dq = q.shape[1]
    S, De = k.shape[1], k.shape[2]
    Dd = wa_w.shape[0]
    Ddp = _round_up(Dd, 128)                                           # lane-dense Dd

    # Pre-transpose weights (no in-kernel transposes); fuse Wa/Ua biases; drop
    # Va's bias (constant over softmax axis => cancels exactly); zero-pad Dd.
    wa_t = jnp.pad(wa_w.T, ((0, 0), (0, Ddp - Dd)))                    # (Dq, Ddp)
    ua_t = jnp.pad(ua_w.T, ((0, 0), (0, Ddp - Dd)))                    # (De, Ddp)
    bias = jnp.pad((wa_b + ua_b).reshape(1, Dd), ((0, 0), (0, Ddp - Dd)))
    va_row = jnp.pad(va_w.reshape(1, Dd), ((0, 0), (0, Ddp - Dd)))
    del va_b  # softmax-invariant

    # Optional bf16 MXU operands (keys stream dominates HBM traffic).
    if mxu_dtype is not None:
        q = q.astype(mxu_dtype)
        k = k.astype(mxu_dtype)
        wa_t = wa_t.astype(mxu_dtype)
        ua_t = ua_t.astype(mxu_dtype)
    bias = bias.astype(jnp.float32)
    va_row = va_row.astype(jnp.float32)

    # Batch-block the grid: large blocks amortize per-step overhead and fill
    # the MXU M dim; round to the sublane multiple and pad B.
    sub = 16 if q.dtype == jnp.bfloat16 else 8
    bblk = min(_round_up(block_b, sub), _round_up(B, sub))
    if bblk == _round_up(B, sub) and bblk >= 2 * sub:
        # Ensure >=2 parallel grid steps so a 2-TC chip (v7x) uses both cores.
        bblk = _round_up(pl.cdiv(B, 2), sub)
    n_blocks = pl.cdiv(B, bblk)
    Bp = n_blocks * bblk
    if Bp != B:
        q = jnp.pad(q, ((0, Bp - B), (0, 0)))
        k = jnp.pad(k, ((0, Bp - B), (0, 0), (0, 0)))

    out_shapes = (
        jax.ShapeDtypeStruct((Bp, De), out_dtype),   # context (2D, lane-dense)
        jax.ShapeDtypeStruct((Bp, S), out_dtype),    # attention weights (2D)
    )

    grid_spec = pltpu.PrefetchScalarGridSpec(
        num_scalar_prefetch=0,
        grid=(n_blocks,),
        in_specs=[
            pl.BlockSpec((bblk, Dq), lambda i: (i, 0)),        # query block
            pl.BlockSpec((bblk, S, De), lambda i: (i, 0, 0)),  # keys block
            pl.BlockSpec((Dq, Ddp), lambda i: (0, 0)),         # Wa^T (VMEM-resident)
            pl.BlockSpec((De, Ddp), lambda i: (0, 0)),         # Ua^T (VMEM-resident)
            pl.BlockSpec((1, Ddp), lambda i: (0, 0)),          # fused bias
            pl.BlockSpec((1, Ddp), lambda i: (0, 0)),          # Va row
        ],
        out_specs=[
            pl.BlockSpec((bblk, De), lambda i: (i, 0)),
            pl.BlockSpec((bblk, S), lambda i: (i, 0)),
        ],
    )

    ctx, attn = pl.pallas_call(
        _bahdanau_kernel,
        out_shape=out_shapes,
        grid_spec=grid_spec,
        compiler_params=pltpu.CompilerParams(
            dimension_semantics=("parallel",),
            vmem_limit_bytes=32 * 1024 * 1024),
    )(q, k, wa_t, ua_t, bias, va_row)

    # Wrapper-side reshape re-adds the size-1 middle axis (module's output shape).
    ctx = ctx[:B].reshape(B, 1, De)
    attn = attn[:B].reshape(B, 1, S)
    return ctx, attn


def _reference(query, keys, wa_w, wa_b, ua_w, ua_b, va_w, va_b):
    q = jnp.transpose(query, (1, 0, 2))
    q = q.reshape(q.shape[0], 1, q.shape[1] * q.shape[2])              # (B, 1, Dq)
    k = keys.reshape(-1, keys.shape[2], keys.shape[3])
    k = jnp.transpose(k, (1, 0, 2))                                    # (B, S, De)
    s = jnp.tanh(q @ wa_w.T + wa_b + k @ ua_w.T + ua_b) @ va_w.T + va_b  # (B, S, 1)
    s = jnp.squeeze(s, axis=-1)[:, None, :]                            # (B, 1, S)
    w = jax.nn.softmax(s, axis=-1)
    ctx = jnp.einsum("bts,bse->bte", w, k)                             # (B, 1, De)
    return ctx, w


if __name__ == "__main__":
    # Shapes consistent with the module: dec_num_layers=2, dec_hidden_size=32,
    # enc_hidden_size=32, batch=2, encoder sequence length=16.
    L, B, Hd = 2, 2, 32          # dec_num_layers, batch, dec_hidden_size
    S, He = 16, 32               # encoder steps, enc_hidden_size
    Dq, Dd = L * Hd, Hd

    key = jax.random.PRNGKey(0)
    kq, kk, kw1, kb1, kw2, kb2, kw3, kb3 = jax.random.split(key, 8)

    query = jax.random.normal(kq, (L, B, Hd), jnp.float32)
    keys = jax.random.normal(kk, (S, 1, B, He), jnp.float32)  # forward reshapes to (B, S, He)

    def linear_params(kw, kb, fan_in, fan_out):
        bound = 1.0 / jnp.sqrt(fan_in)
        w = jax.random.uniform(kw, (fan_out, fan_in), jnp.float32, -bound, bound)
        b = jax.random.uniform(kb, (fan_out,), jnp.float32, -bound, bound)
        return w, b

    wa_w, wa_b = linear_params(kw1, kb1, Dq, Dd)   # Wa: Linear(L*Hd, Dd)
    ua_w, ua_b = linear_params(kw2, kb2, He, Dd)   # Ua: Linear(He, Dd)
    va_w, va_b = linear_params(kw3, kb3, Dd, 1)    # Va: Linear(Dd, 1)

    # f32 path (matches the PyTorch module numerics).
    ctx, attn = bahdanau_attention(query, keys, wa_w, wa_b, ua_w, ua_b,
                                   va_w, va_b)
    jax.block_until_ready((ctx, attn))

    ctx_exp, attn_exp = _reference(query, keys, wa_w, wa_b, ua_w, ua_b,
                                   va_w, va_b)
    assert ctx.shape == ctx_exp.shape and attn.shape == attn_exp.shape
    assert jnp.allclose(attn, attn_exp, atol=1e-3, rtol=1e-3), \
        float(jnp.max(jnp.abs(attn - attn_exp)))
    assert jnp.allclose(ctx, ctx_exp, atol=1e-3, rtol=1e-3), \
        float(jnp.max(jnp.abs(ctx - ctx_exp)))

    # bf16-MXU path (v6e/v7x HBM-traffic optimization); looser tolerance.
    ctx_bf, attn_bf = bahdanau_attention(query, keys, wa_w, wa_b, ua_w, ua_b,
                                         va_w, va_b, mxu_dtype=jnp.bfloat16)
    jax.block_until_ready((ctx_bf, attn_bf))
    assert jnp.allclose(ctx_bf, ctx_exp, atol=5e-2, rtol=5e-2)
    assert jnp.allclose(attn_bf, attn_exp, atol=5e-2, rtol=5e-2)

    print("KERNEL_OK")
</pallas_src>

<mosaic_0001>
module attributes {stable_mosaic.version = 11 : i64} {
  func.func @_bahdanau_kernel(%arg0: i32, %arg1: memref<8x64xf32, #tpu.memory_space<vmem>>, %arg2: memref<8x16x32xf32, #tpu.memory_space<vmem>>, %arg3: memref<64x128xf32, #tpu.memory_space<vmem>>, %arg4: memref<32x128xf32, #tpu.memory_space<vmem>>, %arg5: memref<1x128xf32, #tpu.memory_space<vmem>>, %arg6: memref<1x128xf32, #tpu.memory_space<vmem>>, %arg7: memref<8x32xf32, #tpu.memory_space<vmem>>, %arg8: memref<8x16xf32, #tpu.memory_space<vmem>>) attributes {dimension_semantics = [#tpu.dimension_semantics<parallel>], iteration_bounds = array<i64: 1>, scalar_prefetch = 0 : i64, scratch_operands = 0 : i64, tpu.core_type = #tpu.core_type<tc>, window_params = [{transform_indices = @transform_0, window_bounds = array<i64: 8, 64>}, {transform_indices = @transform_1, window_bounds = array<i64: 8, 16, 32>}, {pipeline_mode = #tpu.pipeline_mode<synchronous>, transform_indices = @transform_2, window_bounds = array<i64: 64, 128>}, {pipeline_mode = #tpu.pipeline_mode<synchronous>, transform_indices = @transform_3, window_bounds = array<i64: 32, 128>}, {pipeline_mode = #tpu.pipeline_mode<synchronous>, transform_indices = @transform_4, window_bounds = array<i64: 1, 128>}, {pipeline_mode = #tpu.pipeline_mode<synchronous>, transform_indices = @transform_5, window_bounds = array<i64: 1, 128>}, {transform_indices = @transform_6, window_bounds = array<i64: 8, 32>}, {transform_indices = @transform_7, window_bounds = array<i64: 8, 16>}]} {
    %c0 = arith.constant 0 : index
    %c0_0 = arith.constant 0 : index
    %0 = vector.load %arg1[%c0, %c0_0] : memref<8x64xf32, #tpu.memory_space<vmem>>, vector<8x64xf32>
    %c0_1 = arith.constant 0 : index
    %c0_2 = arith.constant 0 : index
    %c0_3 = arith.constant 0 : index
    %1 = vector.load %arg2[%c0_1, %c0_2, %c0_3] : memref<8x16x32xf32, #tpu.memory_space<vmem>>, vector<8x16x32xf32>
    %c0_4 = arith.constant 0 : index
    %c0_5 = arith.constant 0 : index
    %2 = vector.load %arg3[%c0_4, %c0_5] : memref<64x128xf32, #tpu.memory_space<vmem>>, vector<64x128xf32>
    %cst = arith.constant dense<0.000000e+00> : vector<8x128xf32>
    %3 = tpu.matmul %0, %2, %cst {dimension_numbers = #tpu.dot_dimension_numbers<[1], [0], [0], [1], [0, 0, 1, 1], [], []>} : vector<8x64xf32>, vector<64x128xf32>, vector<8x128xf32> -> vector<8x128xf32>
    %4 = vector.shape_cast %1 : vector<8x16x32xf32> to vector<128x32xf32>
    %c0_6 = arith.constant 0 : index
    %c0_7 = arith.constant 0 : index
    %5 = vector.load %arg4[%c0_6, %c0_7] : memref<32x128xf32, #tpu.memory_space<vmem>>, vector<32x128xf32>
    %cst_8 = arith.constant dense<0.000000e+00> : vector<128x128xf32>
    %6 = tpu.matmul %4, %5, %cst_8 {dimension_numbers = #tpu.dot_dimension_numbers<[1], [0], [0], [1], [0, 0, 1, 1], [], []>} : vector<128x32xf32>, vector<32x128xf32>, vector<128x128xf32> -> vector<128x128xf32>
    %7 = vector.shape_cast %6 : vector<128x128xf32> to vector<8x16x128xf32>
    %8 = vector.shape_cast %3 : vector<8x128xf32> to vector<8x1x128xf32>
    %9 = vector.broadcast %8 : vector<8x1x128xf32> to vector<8x16x128xf32>
    %10 = arith.addf %7, %9 : vector<8x16x128xf32>
    %c0_9 = arith.constant 0 : index
    %c0_10 = arith.constant 0 : index
    %11 = vector.load %arg5[%c0_9, %c0_10] : memref<1x128xf32, #tpu.memory_space<vmem>>, vector<1x128xf32>
    %12 = vector.shape_cast %11 : vector<1x128xf32> to vector<1x1x128xf32>
    %13 = vector.broadcast %12 : vector<1x1x128xf32> to vector<8x16x128xf32>
    %14 = arith.addf %10, %13 : vector<8x16x128xf32>
    %15 = math.tanh %14 : vector<8x16x128xf32>
    %c0_11 = arith.constant 0 : index
    %c0_12 = arith.constant 0 : index
    %16 = vector.load %arg6[%c0_11, %c0_12] : memref<1x128xf32, #tpu.memory_space<vmem>>, vector<1x128xf32>
    %17 = vector.shape_cast %16 : vector<1x128xf32> to vector<1x1x128xf32>
    %18 = vector.broadcast %17 : vector<1x1x128xf32> to vector<8x16x128xf32>
    %19 = arith.mulf %15, %18 : vector<8x16x128xf32>
    %cst_13 = arith.constant dense<0.000000e+00> : vector<8x16xf32>
    %20 = vector.multi_reduction <add>, %19, %cst_13 [2] : vector<8x16x128xf32> to vector<8x16xf32>
    %cst_14 = arith.constant dense<0xFF800000> : vector<8xf32>
    %21 = vector.multi_reduction <maximumf>, %20, %cst_14 [1] : vector<8x16xf32> to vector<8xf32>
    %22 = vector.shape_cast %21 : vector<8xf32> to vector<8x1xf32>
    %23 = vector.broadcast %22 : vector<8x1xf32> to vector<8x16xf32>
    %24 = arith.subf %20, %23 : vector<8x16xf32>
    %25 = math.exp %24 : vector<8x16xf32>
    %cst_15 = arith.constant dense<0.000000e+00> : vector<8xf32>
    %26 = vector.multi_reduction <add>, %25, %cst_15 [1] : vector<8x16xf32> to vector<8xf32>
    %27 = vector.shape_cast %26 : vector<8xf32> to vector<8x1xf32>
    %28 = tpu.reciprocal %27 {approx = true} : vector<8x1xf32> -> vector<8x1xf32>
    %29 = vector.broadcast %28 : vector<8x1xf32> to vector<8x16xf32>
    %30 = arith.mulf %25, %29 : vector<8x16xf32>
    %31 = vector.shape_cast %30 : vector<8x16xf32> to vector<8x16x1xf32>
    %32 = vector.broadcast %31 : vector<8x16x1xf32> to vector<8x16x32xf32>
    %33 = arith.mulf %32, %1 : vector<8x16x32xf32>
    %cst_16 = arith.constant dense<0.000000e+00> : vector<8x32xf32>
    %34 = vector.multi_reduction <add>, %33, %cst_16 [1] : vector<8x16x32xf32> to vector<8x32xf32>
    %c0_17 = arith.constant 0 : index
    %c0_18 = arith.constant 0 : index
    %35 = vector.load %arg8[%c0_17, %c0_18] : memref<8x16xf32, #tpu.memory_space<vmem>>, vector<8x16xf32>
    tpu.vector_store %arg8[%c0_17, %c0_18], %30 {strides = array<i32>} : memref<8x16xf32, #tpu.memory_space<vmem>>, vector<8x16xf32>,
    %c0_19 = arith.constant 0 : index
    %c0_20 = arith.constant 0 : index
    %36 = vector.load %arg7[%c0_19, %c0_20] : memref<8x32xf32, #tpu.memory_space<vmem>>, vector<8x32xf32>
    tpu.vector_store %arg7[%c0_19, %c0_20], %34 {strides = array<i32>} : memref<8x32xf32, #tpu.memory_space<vmem>>, vector<8x32xf32>,
    return
  }
  func.func @transform_0(%arg0: i32) -> (i32, i32) {
    %c0_i32 = arith.constant 0 : i32
    %c0_i32_0 = arith.constant 0 : i32
    return %arg0, %c0_i32 : i32, i32
  }
  func.func @transform_1(%arg0: i32) -> (i32, i32, i32) {
    %c0_i32 = arith.constant 0 : i32
    %c0_i32_0 = arith.constant 0 : i32
    %c0_i32_1 = arith.constant 0 : i32
    return %arg0, %c0_i32, %c0_i32_0 : i32, i32, i32
  }
  func.func @transform_2(%arg0: i32) -> (i32, i32) {
    %c0_i32 = arith.constant 0 : i32
    %c0_i32_0 = arith.constant 0 : i32
    %c0_i32_1 = arith.constant 0 : i32
    return %c0_i32, %c0_i32_0 : i32, i32
  }
  func.func @transform_3(%arg0: i32) -> (i32, i32) {
    %c0_i32 = arith.constant 0 : i32
    %c0_i32_0 = arith.constant 0 : i32
    %c0_i32_1 = arith.constant 0 : i32
    return %c0_i32, %c0_i32_0 : i32, i32
  }
  func.func @transform_4(%arg0: i32) -> (i32, i32) {
    %c0_i32 = arith.constant 0 : i32
    %c0_i32_0 = arith.constant 0 : i32
    %c0_i32_1 = arith.constant 0 : i32
    return %c0_i32, %c0_i32_0 : i32, i32
  }
  func.func @transform_5(%arg0: i32) -> (i32, i32) {
    %c0_i32 = arith.constant 0 : i32
    %c0_i32_0 = arith.constant 0 : i32
    %c0_i32_1 = arith.constant 0 : i32
    return %c0_i32, %c0_i32_0 : i32, i32
  }
  func.func @transform_6(%arg0: i32) -> (i32, i32) {
    %c0_i32 = arith.constant 0 : i32
    %c0_i32_0 = arith.constant 0 : i32
    return %arg0, %c0_i32 : i32, i32
  }
  func.func @transform_7(%arg0: i32) -> (i32, i32) {
    %c0_i32 = arith.constant 0 : i32
    %c0_i32_0 = arith.constant 0 : i32
    return %arg0, %c0_i32 : i32, i32
  }
}

</mosaic_0001>

<bundles_post_ra>
// kernel: tpu_custom_call.1
= control target key start
LH: loop header
LB: loop body
LE: loop exit
PB: predicated region body
PF: predicated region fallthrough
CT: control target
= control target key end

     0   :  { %13 = vsyncpa [#allocation3], 0  ;;  %s1654_s0 = inlined_call_operand.hbm [shape: f32[8,64], index: 0, kind: input, shape index: {}]   ;;  %s1655_s1 = inlined_call_operand.hbm [shape: f32[8,16,32], index: 1, kind: input, shape index: {}]   ;;  %s1656_s2 = inlined_call_operand.hbm [shape: f32[64,128], index: 2, kind: input, shape index: {}]   ;;  %s1657_s3 = inlined_call_operand.hbm [shape: f32[32,128], index: 3, kind: input, shape index: {}]   ;;  %s1658_s4 = inlined_call_operand.vmem [shape: f32[1,128], index: 4, kind: input, shape index: {}]   ;;  %s1659_s5 = inlined_call_operand.vmem [shape: f32[1,128], index: 5, kind: input, shape index: {}]   ;;  %s1660_s6 = inlined_call_operand.hbm [shape: f32[8,32], index: 6, kind: output, shape index: {0}]   ;;  %s1661_s7 = inlined_call_operand.hbm [shape: f32[8,16], index: 7, kind: output, shape index: {1}]  }
   0x1   :  { %14 = vsyncpa [#allocation6], 0 }
   0x2   :  { %15 = vsyncpa [#allocation9], 0 }
   0x3   :  { %16 = vsyncpa [#allocation4], 0  ;;  %s33_s26 = sshll.u32 %s1655_s1, 4  ;;  %s34_s26 = int_to_ptr.hbm [resolvable:$true] %s33_s26 }
   0x4   :  { %17 = vsyncpa [#allocation12], 0  ;;  %s1160_s27 = smov [#allocation5]   ;;  %s23_s8 = sshll.u32 %s1654_s0, 4  ;;  %s24_s8 = int_to_ptr.hbm [resolvable:$true] %s23_s8 }
   0x5   :  { %s35_s28 = sshll.u32 %s1160_s27, 4  ;;  %s1161_s9 = smov 128   ;;  %s36_s28 = int_to_ptr.vmem [resolvable:$true] %s35_s28 }
   0x6   :  { %s1162_s10 = smov 8   ;;  %s1163_s11 = smov [#allocation2]  }
   0x7   :  { %41 = dma.hbm_to_vmem [thread:$0]  %s34_s26, 2048, %s36_s28, [#allocation6], %s1161_s9, %s1161_s9, %s1162_s10  }
   0x8   :  { %s25_s12 = sshll.u32 %s1163_s11, 4  ;;  %s46_s15 = sshll.u32 %s1656_s2, 4  ;;  %s26_s12 = int_to_ptr.vmem [resolvable:$true] %s25_s12  ;;  %s47_s15 = int_to_ptr.hbm [resolvable:$true] %s46_s15 }
   0x9   :  { %28 = dma.hbm_to_vmem [thread:$0]  %s24_s8, 128, %s26_s12, [#allocation3]  }
   0xa   :  { %s59_s17 = sshll.u32 %s1657_s3, 4  ;;  %s1164_s18 = smov [#allocation7]   ;;  %s60_s17 = int_to_ptr.hbm [resolvable:$true] %s59_s17 }
   0xb   :  { %s48_s19 = sshll.u32 %s1164_s18, 4  ;;  %s1165_s0 = smov [#allocation8]   ;;  %s49_s19 = int_to_ptr.vmem [resolvable:$true] %s48_s19 }
   0xc   :  { %54 = dma.hbm_to_vmem [thread:$0]  %s47_s15, 1024, %s49_s19, [#allocation6], %s1161_s9, %s1161_s9, %s1162_s10  }
   0xd   :  { %s61_s20 = sshll.u32 %s1165_s0, 4  ;;  %s62_s20 = int_to_ptr.vmem [resolvable:$true] %s61_s20 }
   0xe   :  { %67 = dma.hbm_to_vmem [thread:$0]  %s60_s17, 512, %s62_s20, [#allocation9], %s1161_s9, %s1161_s9, %s1162_s10  }
   0xf   :  { %1150 = dma.done.wait [#allocation3], 128  }
  0x10   :  { %1151 = vsyncadd [#allocation3], 4294967168 }
  0x11   :  { %1152 = dma.done.wait [#allocation6], 3072  }
  0x12   :  { %1153 = vsyncadd [#allocation6], 4294964224 }
  0x13   :  { %1154 = dma.done.wait [#allocation9], 512  }
  0x14   :  { %1155 = vsyncadd [#allocation9], 4294966784  ;;  %v112_v0 = vld [vmem:[#allocation7 + $0x38] sm:$0xff]  ;;  %v111_v2 = vld [vmem:[#allocation7 + $0x30] sm:$0xff]  ;;  %vm141_vm0 = vcmask 261120   ;;  %vm113_vm1 = vcmask 523264  }
  0x15   :  { %v140_v1 = vld [vmem:[#allocation8 + $0x18] sm:$0xff]  ;;  %125 = vmatpush.msra.mxu0 %v112_v0  ;;  %v139_v3 = vld [vmem:[#allocation8 + $0x10] sm:$0xff]  ;;  %v110_v4 = vld [vmem:[#allocation7 + $0x28] sm:$0xff]  ;;  %vm404_vm2 = vcmask 130112   ;;  %vm427_vm3 = vcmask 1041409   ;;  %vm429_vm4 = vcmask 1042434  }
  0x16   :  { %914 = vmatpush.msra.mxu1 %v140_v1  ;;  %915 = vmatpush.msra.mxu2 %v140_v1  ;;  %v138_v5 = vld [vmem:[#allocation8 + $0x8] sm:$0xff]  ;;  %v109_v6 = vld [vmem:[#allocation7 + $0x20] sm:$0xff]  ;;  %v1223_v9 = vld [vmem:[#allocation5 + $0x30] sm:$0xff]  ;;  %vm431_vm5 = vcmask 1043459   ;;  %vm433_vm6 = vcmask 1044484   ;;  %vm435_vm7 = vcmask 1045509  }
  0x17   :  { %916 = vmatpush.msra.mxu3 %v140_v1  ;;  %126 = vmatpush.msra.mxu0 %v111_v2  ;;  %v137_v7 = vld [vmem:[#allocation8] sm:$0xff]  ;;  %v1221_v8 = vld [vmem:[#allocation5 + $0x8] sm:$0xff]  ;;  %v1225_v10 = vld [vmem:[#allocation5 + $0x58] sm:$0xff]  ;;  %vm437_vm8 = vcmask 1046534   ;;  %vm439_vm9 = vcmask 1047559   ;;  %vm442_vm10 = vcmask 130048  }
  0x18   :  { %917 = vmatpush.msra.mxu1 %v139_v3  ;;  %918 = vmatpush.msra.mxu2 %v139_v3  ;;  %v108_v11 = vld [vmem:[#allocation7 + $0x18] sm:$0xff]  ;;  %v107_v12 = vld [vmem:[#allocation7 + $0x10] sm:$0xff]  ;;  %v106_v13 = vld [vmem:[#allocation7 + $0x8] sm:$0xff]  ;;  %s880_s25 = sshll.u32 %s1661_s7, 4  ;;  %s1168_s7 = smov [#allocation10]   ;;  %s881_s25 = int_to_ptr.hbm [resolvable:$true] %s880_s25 }
  0x19   :  { %919 = vmatpush.msra.mxu3 %v139_v3  ;;  %127 = vmatpush.msra.mxu0 %v110_v4  ;;  %v105_v14 = vld [vmem:[#allocation7] sm:$0xff]  ;;  %v88_v15 = vld [vmem:[#allocation2] sm:$0xff]  ;;  %v1233_v16 = vld [vmem:[#allocation5 + $0x10] sm:$0xff]  ;;  %s867_s26 = sshll.u32 %s1168_s7, 4  ;;  %s869_s29 = sshll.u32 %s1660_s6, 4  ;;  %s868_s26 = int_to_ptr.vmem [resolvable:$true] %s867_s26  ;;  %s870_s29 = int_to_ptr.hbm [resolvable:$true] %s869_s29 }
  0x1a   :  { %920 = vmatpush.msra.mxu1 %v138_v5  ;;  %921 = vmatpush.msra.mxu2 %v138_v5  ;;  %v1235_v17 = vld [vmem:[#allocation5 + $0x38] sm:$0xff]  ;;  %v1237_v18 = vld [vmem:[#allocation5 + $0x60] sm:$0xff]  ;;  %v1251_v22 = vld [vmem:[#allocation5 + $0x68] sm:$0xff] }
  0x1b   :  { %922 = vmatpush.msra.mxu3 %v138_v5  ;;  %128 = vmatpush.msra.mxu0 %v109_v6  ;;  %v1245_v19 = vld [vmem:[#allocation5 + $0x18] sm:$0xff]  ;;  %v1247_v20 = vld [vmem:[#allocation5] sm:$0xff]  ;;  %v1263_v24 = vld [vmem:[#allocation5 + $0x48] sm:$0xff] }
  0x1c   :  { %923 = vmatpush.msra.mxu1 %v137_v7  ;;  %924 = vmatpush.msra.mxu2 %v137_v7  ;;  %v1249_v21 = vld [vmem:[#allocation5 + $0x40] sm:$0xff]  ;;  %v1265_v25 = vld [vmem:[#allocation5 + $0x70] sm:$0xff]  ;;  %v1273_v26 = vld [vmem:[#allocation5 + $0x28] sm:$0xff] }
  0x1d   :  { %925 = vmatpush.msra.mxu3 %v137_v7  ;;  %899 = vmatmul.msk.f32.vlgmr.msra.gmra.mxu1 %vm141_vm0, %v1221_v8  ;;  %v1261_v23 = vld [vmem:[#allocation5 + $0x20] sm:$0xff]  ;;  %v1275_v27 = vld [vmem:[#allocation5 + $0x50] sm:$0xff]  ;;  %v1277_v28 = vld [vmem:[#allocation5 + $0x78] sm:$0xff] }
  0x1e   :  { %904 = vmatmul.msk.f32.vlgmr.msra.gmra.mxu2 %vm141_vm0, %v1223_v9  ;;  %909 = vmatmul.msk.f32.vlgmr.msra.gmra.mxu3 %vm141_vm0, %v1225_v10  ;;  %v1291_v35 = vld [vmem:[%s1658_s4] ss:$0 sm:$0xff] }
  0x1f   :  { %129 = vmatpush.msra.mxu0 %v108_v11  ;;  %v1308_v56 = vld [vmem:[%s1659_s5] ss:$0 sm:$0xff]  ;;  %s1167_s5 = smov [#allocation11]  }
  0x20   :  { %s878_s22 = sshll.u32 %s1167_s5, 4  ;;  %s879_s22 = int_to_ptr.vmem [resolvable:$true] %s878_s22 }
  0x21   :  { %130 = vmatpush.msra.mxu0 %v107_v12 }
  0x23   :  { %131 = vmatpush.msra.mxu0 %v106_v13 }
  0x25   :  { %132 = vmatpush.msra.mxu0 %v105_v14  ;;  %900 = vmatmul.msk.f32.gmra.mxu1 %vm141_vm0, %v1233_v16 }
  0x26   :  { %897 = vmatmul.msk.f32.vlgmr.msra.gmra.mxu0 %vm113_vm1, %v88_v15  ;;  %905 = vmatmul.msk.f32.gmra.mxu2 %vm141_vm0, %v1235_v17 }
  0x27   :  { %910 = vmatmul.msk.f32.gmra.mxu3 %vm141_vm0, %v1237_v18  ;;  %202 = vmatpush.msrb.mxu0 %v140_v1 }
  0x29   :  { %203 = vmatpush.msrb.mxu0 %v139_v3 }
  0x2b   :  { %204 = vmatpush.msrb.mxu0 %v138_v5 }
  0x2d   :  { %205 = vmatpush.msrb.mxu0 %v137_v7  ;;  %901 = vmatmul.msk.f32.gmra.mxu1 %vm141_vm0, %v1245_v19 }
  0x2e   :  { %898 = vmatmul.msk.f32.vlgmr.msrb.gmra.mxu0 %vm141_vm0, %v1247_v20  ;;  %906 = vmatmul.msk.f32.gmra.mxu2 %vm141_vm0, %v1249_v21 }
  0x2f   :  { %911 = vmatmul.msk.f32.gmra.mxu3 %vm141_vm0, %v1251_v22 }
  0x35   :  { %902 = vmatmul.msk.f32.gmra.mxu1 %vm141_vm0, %v1261_v23 }
  0x36   :  { %907 = vmatmul.msk.f32.gmra.mxu2 %vm141_vm0, %v1263_v24 }
  0x37   :  { %912 = vmatmul.msk.f32.gmra.mxu3 %vm141_vm0, %v1265_v25 }
  0x3d   :  { %903 = vmatmul.msk.f32.gmra.mxu1 %vm141_vm0, %v1273_v26 }
  0x3e   :  { %908 = vmatmul.msk.f32.gmra.mxu2 %vm141_vm0, %v1275_v27 }
  0x3f   :  { %913 = vmatmul.msk.f32.gmra.mxu3 %vm141_vm0, %v1277_v28 }
  0x9a   :  { %v210_v29 = vpop.f32.mrf.mxu1 }
  0xa1   :  { %v225_v30 = vpop.f32.mrf.mxu2  ;;  %v240_v31 = vpop.f32.mrf.mxu3 }
  0xa2   :  { %v213_v33 = vpop.f32.mrf.mxu1 }
  0xa3   :  { %v1285_v32 = vpop.f32.mrf.mxu0 }
  0xa4   :  { %v256_v34 = vrot.slane %v1285_v32, 1  ;;  %v258_v36 = vrot.slane %v1285_v32, 3  ;;  %v263_v37 = vperm.slane %v1285_v32, 0  ;;  %v260_v38 = vrot.slane %v1285_v32, 5 }
  0xa5   :  { %v261_v50 = vrot.slane %v1285_v32, 6  ;;  %v259_v55 = vrot.slane %v1285_v32, 4  ;;  %v257_v59 = vrot.slane %v1285_v32, 2 }
  0xa6   :  { %v264_v39 = vperm.slane %v256_v34, 0  ;;  %v266_v40 = vperm.slane %v258_v36, 0  ;;  %v280_v41 = vadd.f32 %v263_v37, %v210_v29  ;;  %v1296_v42 = vperm.slane %v260_v38, 0 }
  0xa7   :  { %v269_v58 = vperm.slane %v261_v50, 0  ;;  %v267_v62 = vperm.slane %v259_v55, 0  ;;  %v265_v6 = vperm.slane %v257_v59, 0 }
  0xa8   :  { %v281_v43 = vadd.f32 %v264_v39, %v213_v33  ;;  %v285_v44 = vadd.f32 %v266_v40, %v225_v30  ;;  %v300_v45 = vadd.f32 %v1291_v35, %v280_v41  ;;  %v290_v46 = vadd.f32 %v1296_v42, %v240_v31 }
  0xa9   :  { %v228_v48 = vpop.f32.mrf.mxu2 }
  0xaa   :  { %v301_v47 = vadd.f32 %v1291_v35, %v281_v43  ;;  %v243_v49 = vpop.f32.mrf.mxu3  ;;  %940 = vtanh.f32 %v300_v45  ;;  %v286_v51 = vadd.f32 %v266_v40, %v228_v48  ;;  %v216_v52 = vpop.f32.mrf.mxu1  ;;  %v310_v53 = vadd.f32 %v1291_v35, %v290_v46 }
  0xab   :  { %v305_v54 = vadd.f32 %v1291_v35, %v285_v44  ;;  %v291_v61 = vadd.f32 %v269_v58, %v243_v49  ;;  %v282_v1 = vadd.f32 %v264_v39, %v216_v52  ;;  %v207_v13 = vpop.f32.mrf.mxu0  ;;  %v262_v48 = vrot.slane %v1285_v32, 7 }
  0xac   :  { %942 = vtanh.f32 %v301_v47  ;;  %v306_v57 = vadd.f32 %v1291_v35, %v286_v51  ;;  %v279_v34 = vadd.f32 %v263_v37, %v207_v13 }
  0xad   :  { %944 = vtanh.f32 %v310_v53  ;;  %v311_v12 = vadd.f32 %v1291_v35, %v291_v61  ;;  %v302_v31 = vadd.f32 %v1291_v35, %v282_v1  ;;  %v270_v55 = vperm.slane %v262_v48, 0 }
  0xae   :  { %946 = vtanh.f32 %v305_v54  ;;  %v299_v44 = vadd.f32 %v1291_v35, %v279_v34 }
  0xaf   :  { %948 = vtanh.f32 %v306_v57 }
  0xb0   :  { %v941_v60 = vpop.eup %940 }
  0xb1   :  { %v336_v63 = vmul.f32 %v941_v60, %v1308_v56  ;;  %v231_v2 = vpop.f32.mrf.mxu2 }
  0xb2   :  { %v943_v0 = vpop.eup %942  ;;  %v287_v3 = vadd.f32 %v267_v62, %v231_v2  ;;  %v246_v4 = vpop.f32.mrf.mxu3 }
  0xb3   :  { %v219_v5 = vpop.f32.mrf.mxu1  ;;  %353 = vadd.xlane.f32.xlu0 %v336_v63  ;;  %v337_v7 = vmul.f32 %v943_v0, %v1308_v56  ;;  %v945_v11 = vpop.eup %944  ;;  %v292_v60 = vadd.f32 %v269_v58, %v246_v4 }
  0xb4   :  { %v307_v14 = vadd.f32 %v1291_v35, %v287_v3  ;;  %v283_v15 = vadd.f32 %v265_v6, %v219_v5  ;;  %v346_v29 = vmul.f32 %v945_v11, %v1308_v56  ;;  %v947_v30 = vpop.eup %946 }
  0xb5   :  { %355 = vadd.xlane.f32.xlu1 %v337_v7  ;;  %v949_v33 = vpop.eup %948  ;;  %v341_v38 = vmul.f32 %v947_v30, %v1308_v56  ;;  %v312_v2 = vadd.f32 %v1291_v35, %v292_v60 }
  0xb6   :  { %950 = vtanh.f32 %v307_v14  ;;  %373 = vadd.xlane.f32.xlu2 %v346_v29  ;;  %v303_v36 = vadd.f32 %v1291_v35, %v283_v15  ;;  %v342_v43 = vmul.f32 %v949_v33, %v1308_v56 }
  0xb7   :  { %952 = vtanh.f32 %v311_v12 }
  0xb8   :  { %954 = vtanh.f32 %v302_v31 }
  0xb9   :  { %v234_v39 = vpop.f32.mrf.mxu2  ;;  %956 = vtanh.f32 %v303_v36 }
  0xba   :  { %v249_v40 = vpop.f32.mrf.mxu3  ;;  %958 = vtanh.f32 %v299_v44  ;;  %v288_v50 = vadd.f32 %v267_v62, %v234_v39 }
  0xbb   :  { %v222_v41 = vpop.f32.mrf.mxu1  ;;  %363 = vadd.xlane.f32.xlu0 %v341_v38  ;;  %v293_v32 = vadd.f32 %v270_v55, %v249_v40 }
  0xbc   :  { %v951_v45 = vpop.eup %950  ;;  %v284_v46 = vadd.f32 %v265_v6, %v222_v41  ;;  %v308_v61 = vadd.f32 %v1291_v35, %v288_v50 }
  0xbd   :  { %365 = vadd.xlane.f32.xlu1 %v342_v43  ;;  %v953_v47 = vpop.eup %952  ;;  %v343_v37 = vmul.f32 %v951_v45, %v1308_v56  ;;  %v313_v3 = vadd.f32 %v1291_v35, %v293_v32  ;;  %v399_v43 = vlaneseq }
  0xbe   :  { %v955_v49 = vpop.eup %954  ;;  %v304_v51 = vadd.f32 %v1291_v35, %v284_v46  ;;  %v347_v52 = vmul.f32 %v953_v47, %v1308_v56 }
  0xbf   :  { %367 = vadd.xlane.f32.xlu2 %v343_v37  ;;  %v957_v54 = vpop.eup %956  ;;  %v338_v59 = vmul.f32 %v955_v49, %v1308_v56  ;;  %v1355_v44 = vand.u32 127, %v399_v43 }
  0xc0   :  { %960 = vtanh.f32 %v304_v51  ;;  %v959_v0 = vpop.eup %958  ;;  %v339_v1 = vmul.f32 %v957_v54, %v1308_v56 }
  0xc1   :  { %v237_v53 = vpop.f32.mrf.mxu2  ;;  %v335_v58 = vmul.f32 %v959_v0, %v1308_v56  ;;  %v1362_v47 = vadd.s32 4294967288, %v1355_v44 }
  0xc2   :  { %v289_v57 = vadd.f32 %v1296_v42, %v237_v53  ;;  %v252_v63 = vpop.f32.mrf.mxu3 }
  0xc3   :  { %375 = vadd.xlane.f32.xlu0 %v347_v52  ;;  %v294_v42 = vadd.f32 %v270_v55, %v252_v63 }
  0xc4   :  { %v309_v62 = vadd.f32 %v1291_v35, %v289_v57 }
  0xc5   :  { %357 = vadd.xlane.f32.xlu1 %v338_v59  ;;  %v314_v5 = vadd.f32 %v1291_v35, %v294_v42 }
  0xc6   :  { %962 = vtanh.f32 %v309_v62  ;;  %v961_v4 = vpop.eup %960 }
  0xc7   :  { %964 = vtanh.f32 %v308_v61  ;;  %359 = vadd.xlane.f32.xlu2 %v339_v1  ;;  %v340_v11 = vmul.f32 %v961_v4, %v1308_v56 }
  0xc8   :  { %966 = vtanh.f32 %v312_v2 }
  0xc9   :  { %968 = vtanh.f32 %v313_v3 }
  0xca   :  { %970 = vtanh.f32 %v314_v5 }
  0xcb   :  { %351 = vadd.xlane.f32.xlu0 %v335_v58 }
  0xcc   :  { %v963_v6 = vpop.eup %962 }
  0xcd   :  { %v965_v7 = vpop.eup %964  ;;  %v345_v12 = vmul.f32 %v963_v6, %v1308_v56 }
  0xce   :  { %v344_v13 = vmul.f32 %v965_v7, %v1308_v56  ;;  %v967_v14 = vpop.eup %966 }
  0xcf   :  { %361 = vadd.xlane.f32.xlu2 %v340_v11  ;;  %371 = vadd.xlane.f32.xlu1 %v345_v12  ;;  %v969_v15 = vpop.eup %968  ;;  %v348_v35 = vmul.f32 %v967_v14, %v1308_v56 }
  0xd0   :  { %v971_v29 = vpop.eup %970  ;;  %v349_v30 = vmul.f32 %v969_v15, %v1308_v56 }
  0xd1   :  { %v350_v31 = vmul.f32 %v971_v29, %v1308_v56 }
  0xd3   :  { %369 = vadd.xlane.f32.xlu0 %v344_v13 }
  0xd7   :  { %379 = vadd.xlane.f32.xlu2 %v349_v30  ;;  %377 = vadd.xlane.f32.xlu1 %v348_v35 }
  0xdb   :  { %381 = vadd.xlane.f32.xlu0 %v350_v31 }
 0x126   :  { %v1341_v33 = vpop.xlane.xlu0 %353 }
 0x127   :  { %v403_v48 = vperm.slane %v1341_v33, %v1362_v47 }
 0x128   :  { %v1343_v34 = vpop.xlane.xlu1 %355 }
 0x129   :  { %v1345_v36 = vpop.xlane.xlu2 %373  ;;  %v406_v54 = vperm.slane %v1343_v34, %v1355_v44 }
 0x12a   :  { %v419_v11 = vperm.slane %v1345_v36, %v1362_v47 }
 0x12e   :  { %v1347_v38 = vpop.xlane.xlu0 %363 }
 0x12f   :  { %v412_v0 = vperm.slane %v1347_v38, %v1355_v44 }
 0x130   :  { %v1349_v39 = vpop.xlane.xlu1 %365 }
 0x131   :  { %v413_v60 = vperm.slane %v1349_v39, %v1362_v47 }
 0x132   :  { %v1351_v40 = vpop.xlane.xlu2 %367 }
 0x133   :  { %v415_v62 = vperm.slane %v1351_v40, %v1355_v44  ;;  %v414_v42 = vsel %vm404_vm2, %v413_v60, %v412_v0 }
 0x136   :  { %v1353_v41 = vpop.xlane.xlu0 %375 }
 0x137   :  { %v421_v4 = vperm.slane %v1353_v41, %v1355_v44 }
 0x138   :  { %v1357_v45 = vpop.xlane.xlu1 %357 }
 0x139   :  { %v407_v49 = vperm.slane %v1357_v45, %v1362_v47 }
 0x13a   :  { %v1359_v56 = vpop.xlane.xlu2 %359 }
 0x13b   :  { %v409_v52 = vperm.slane %v1359_v56, %v1355_v44  ;;  %v408_v61 = vsel %vm404_vm2, %v407_v49, %v406_v54  ;;  %v1166_v49 = vmov 0  }
 0x13c   :  { %937 = vset.pattern.permute.xlu1 %v1166_v49  ;;  %936 = vset.pattern.permute.xlu0 %v1166_v49 }
 0x13d   :  { %935 = vset.pattern.permute.xlu2 %v1166_v49 }
 0x13e   :  { %v352_v46 = vpop.xlane.xlu0 %351 }
 0x13f   :  { %v401_v37 = vperm.slane %v352_v46, %v1355_v44 }
 0x141   :  { %v405_v55 = vsel %vm404_vm2, %v403_v48, %v401_v37 }
 0x142   :  { %v362_v50 = vpop.xlane.xlu2 %361  ;;  %v1369_v51 = vpop.xlane.xlu1 %371  ;;  %v428_v63 = vsel %vm427_vm3, %v408_v61, %v405_v55 }
 0x143   :  { %v410_v53 = vperm.slane %v362_v50, %v1362_v47  ;;  %v418_v3 = vperm.slane %v1369_v51, %v1355_v44 }
 0x145   :  { %v411_v57 = vsel %vm404_vm2, %v410_v53, %v409_v52  ;;  %v420_v15 = vsel %vm404_vm2, %v419_v11, %v418_v3 }
 0x146   :  { %v1378_v59 = vpop.xlane.xlu0 %369  ;;  %v430_v1 = vsel %vm429_vm4, %v411_v57, %v428_v63 }
 0x147   :  { %v416_v32 = vperm.slane %v1378_v59, %v1362_v47  ;;  %v432_v7 = vsel %vm431_vm5, %v414_v42, %v430_v1 }
 0x149   :  { %v417_v2 = vsel %vm404_vm2, %v416_v32, %v415_v62 }
 0x14a   :  { %v1395_v58 = vpop.xlane.xlu1 %377  ;;  %v1399_v5 = vpop.xlane.xlu2 %379  ;;  %v434_v12 = vsel %vm433_vm6, %v417_v2, %v432_v7 }
 0x14b   :  { %v422_v6 = vperm.slane %v1395_v58, %v1362_v47  ;;  %v424_v29 = vperm.slane %v1399_v5, %v1355_v44  ;;  %v436_v35 = vsel %vm435_vm7, %v420_v15, %v434_v12 }
 0x14d   :  { %v423_v14 = vsel %vm404_vm2, %v422_v6, %v421_v4 }
 0x14e   :  { %v1407_v13 = vpop.xlane.xlu0 %381  ;;  %v438_v43 = vsel %vm437_vm8, %v423_v14, %v436_v35 }
 0x14f   :  { %v425_v30 = vperm.slane %v1407_v13, %v1362_v47 }
 0x151   :  { %v426_v31 = vsel %vm404_vm2, %v425_v30, %v424_v29 }
 0x152   :  { %v440_v37 = vsel %vm439_vm9, %v426_v31, %v438_v43 }
 0x153   :  { %v443_v48 = vsel %vm442_vm10, %v440_v37, -inf }
 0x154   :  { %444 = vmax.xlane.f32.xlu1 %v443_v48 }
 0x1c7   :  { %v1420_v52 = vpop.xlane.xlu1 %444 }
 0x1c8   :  { %v448_v53 = vperm.slane %v1420_v52, 1  ;;  %v447_v54 = vperm.slane %v1420_v52, 0  ;;  %v449_v61 = vperm.slane %v1420_v52, 2  ;;  %v451_v32 = vperm.slane %v1420_v52, 4 }
 0x1c9   :  { %v454_v15 = vperm.slane %v1420_v52, 7  ;;  %v453_v37 = vperm.slane %v1420_v52, 6 }
 0x1ca   :  { %v465_v55 = vsub.f32 %v1343_v34, %v448_v53  ;;  %v464_v57 = vsub.f32 %v1341_v33, %v447_v54  ;;  %v463_v60 = vsub.f32 %v352_v46, %v447_v54  ;;  %v468_v1 = vsub.f32 %v362_v50, %v449_v61 }
 0x1cb   :  { %v471_v2 = vsub.f32 %v1351_v40, %v451_v32  ;;  %v466_v42 = vsub.f32 %v1357_v45, %v448_v53  ;;  %v450_v34 = vperm.slane %v1420_v52, 3  ;;  %v452_v46 = vperm.slane %v1420_v52, 5 }
 0x1cc   :  { %v483_v62 = vmul.f32 1.442695, %v465_v55  ;;  %v481_v63 = vmul.f32 1.442695, %v464_v57  ;;  %v479_v0 = vmul.f32 1.442695, %v463_v60  ;;  %v467_v11 = vsub.f32 %v1359_v56, %v449_v61 }
 0x1cd   :  { %v489_v3 = vmul.f32 1.442695, %v468_v1  ;;  %v495_v33 = vmul.f32 1.442695, %v471_v2  ;;  %v485_v6 = vmul.f32 1.442695, %v466_v42  ;;  %v470_v40 = vsub.f32 %v1349_v39, %v450_v34 }
 0x1ce   :  { %972 = vpow2.f32 %v483_v62  ;;  %v474_v45 = vsub.f32 %v1345_v36, %v452_v46  ;;  %v487_v30 = vmul.f32 1.442695, %v467_v11  ;;  %v473_v36 = vsub.f32 %v1369_v51, %v452_v46 }
 0x1cf   :  { %974 = vpow2.f32 %v481_v63  ;;  %v493_v12 = vmul.f32 1.442695, %v470_v40  ;;  %v477_v56 = vsub.f32 %v1399_v5, %v454_v15  ;;  %v469_v31 = vsub.f32 %v1347_v38, %v450_v34 }
 0x1d0   :  { %976 = vpow2.f32 %v479_v0  ;;  %v501_v14 = vmul.f32 1.442695, %v474_v45  ;;  %v499_v43 = vmul.f32 1.442695, %v473_v36  ;;  %v476_v5 = vsub.f32 %v1395_v58, %v453_v37 }
 0x1d1   :  { %978 = vpow2.f32 %v489_v3  ;;  %v507_v48 = vmul.f32 1.442695, %v477_v56  ;;  %v491_v53 = vmul.f32 1.442695, %v469_v31  ;;  %v472_v38 = vsub.f32 %v1378_v59, %v451_v32 }
 0x1d2   :  { %980 = vpow2.f32 %v495_v33  ;;  %v505_v52 = vmul.f32 1.442695, %v476_v5  ;;  %v475_v58 = vsub.f32 %v1353_v41, %v453_v37  ;;  %v478_v63 = vsub.f32 %v1407_v13, %v454_v15 }
 0x1d3   :  { %982 = vpow2.f32 %v485_v6  ;;  %v497_v57 = vmul.f32 1.442695, %v472_v38 }
 0x1d4   :  { %v1432_v4 = vpop.eup %972  ;;  %984 = vpow2.f32 %v493_v12  ;;  %v503_v59 = vmul.f32 1.442695, %v475_v58  ;;  %v509_v0 = vmul.f32 1.442695, %v478_v63 }
 0x1d5   :  { %v1434_v7 = vpop.eup %974  ;;  %534 = vperm.xlu1 %937, %v1432_v4   ;;  %986 = vpow2.f32 %v501_v14 }
 0x1d6   :  { %v1437_v50 = vpop.eup %976  ;;  %531 = vperm.xlu0 %936, %v1434_v7   ;;  %988 = vpow2.f32 %v487_v30 }
 0x1d7   :  { %528 = vperm.xlu2 %935, %v1437_v50   ;;  %v1445_v29 = vpop.eup %978  ;;  %990 = vpow2.f32 %v499_v43 }
 0x1d8   :  { %v1447_v35 = vpop.eup %980  ;;  %992 = vpow2.f32 %v507_v48 }
 0x1d9   :  { %v1450_v39 = vpop.eup %982  ;;  %994 = vpow2.f32 %v491_v53 }
 0x1da   :  { %v1458_v49 = vpop.eup %984  ;;  %996 = vpow2.f32 %v505_v52 }
 0x1db   :  { %v1460_v54 = vpop.eup %986  ;;  %998 = vpow2.f32 %v497_v57 }
 0x1dc   :  { %v1463_v51 = vpop.eup %988  ;;  %1000 = vpow2.f32 %v503_v59 }
 0x1dd   :  { %543 = vperm.xlu1 %937, %v1445_v29   ;;  %v1469_v55 = vpop.eup %990  ;;  %1002 = vpow2.f32 %v509_v0 }
 0x1de   :  { %552 = vperm.xlu0 %936, %v1447_v35   ;;  %v1471_v60 = vpop.eup %992 }
 0x1df   :  { %537 = vperm.xlu2 %935, %v1450_v39   ;;  %v1474_v61 = vpop.eup %994 }
 0x1e0   :  { %v1479_v62 = vpop.eup %996 }
 0x1e1   :  { %v1482_v32 = vpop.eup %998 }
 0x1e2   :  { %v1486_v1 = vpop.eup %1000 }
 0x1e3   :  { %v1489_v2 = vpop.eup %1002 }
 0x1e5   :  { %549 = vperm.xlu1 %937, %v1458_v49  }
 0x1e6   :  { %561 = vperm.xlu0 %936, %v1460_v54  }
 0x1e7   :  { %540 = vperm.xlu2 %935, %v1463_v51  }
 0x1ed   :  { %558 = vperm.xlu1 %937, %v1469_v55  }
 0x1ee   :  { %570 = vperm.xlu0 %936, %v1471_v60  }
 0x1ef   :  { %546 = vperm.xlu2 %935, %v1474_v61  }
 0x1f5   :  { %567 = vperm.xlu1 %937, %v1479_v62  }
 0x1f7   :  { %555 = vperm.xlu2 %935, %v1482_v32  }
 0x1ff   :  { %564 = vperm.xlu2 %935, %v1486_v1  }
 0x207   :  { %573 = vperm.xlu2 %935, %v1489_v2  }
 0x231   :  { %v529_v41 = vpop.permute.xlu2 %528 }
 0x232   :  { %v575_v36 = vperm.slane %v529_v41, %v1355_v44 }
 0x239   :  { %v538_v42 = vpop.permute.xlu2 %537 }
 0x23a   :  { %v579_v56 = vperm.slane %v538_v42, %v1362_v47 }
 0x241   :  { %v541_v3 = vpop.permute.xlu2 %540 }
 0x242   :  { %v581_v37 = vperm.slane %v541_v3, %v1355_v44 }
 0x247   :  { %v535_v34 = vpop.permute.xlu1 %534 }
 0x248   :  { %v532_v33 = vpop.permute.xlu0 %531  ;;  %v578_v14 = vperm.slane %v535_v34, %v1355_v44 }
 0x249   :  { %v547_v46 = vpop.permute.xlu2 %546  ;;  %v576_v15 = vperm.slane %v532_v33, %v1362_v47 }
 0x24a   :  { %v580_v48 = vsel %vm404_vm2, %v579_v56, %v578_v14  ;;  %v584_v5 = vperm.slane %v547_v46, %v1355_v44 }
 0x24b   :  { %v577_v53 = vsel %vm404_vm2, %v576_v15, %v575_v36 }
 0x24c   :  { %v599_v58 = vsel %vm427_vm3, %v580_v48, %v577_v53 }
 0x24f   :  { %v544_v6 = vpop.permute.xlu1 %543 }
 0x250   :  { %v553_v40 = vpop.permute.xlu0 %552  ;;  %v582_v30 = vperm.slane %v544_v6, %v1362_v47 }
 0x251   :  { %v556_v45 = vpop.permute.xlu2 %555  ;;  %v587_v59 = vperm.slane %v553_v40, %v1355_v44 }
 0x252   :  { %v583_v38 = vsel %vm404_vm2, %v582_v30, %v581_v37  ;;  %v588_v63 = vperm.slane %v556_v45, %v1362_v47 }
 0x253   :  { %v600_v42 = vsel %vm429_vm4, %v583_v38, %v599_v58 }
 0x254   :  { %v589_v14 = vsel %vm404_vm2, %v588_v63, %v587_v59 }
 0x257   :  { %v550_v13 = vpop.permute.xlu1 %549 }
 0x258   :  { %v562_v11 = vpop.permute.xlu0 %561  ;;  %v585_v31 = vperm.slane %v550_v13, %v1362_v47 }
 0x259   :  { %v565_v12 = vpop.permute.xlu2 %564  ;;  %v591_v3 = vperm.slane %v562_v11, %v1362_v47 }
 0x25a   :  { %v586_v52 = vsel %vm404_vm2, %v585_v31, %v584_v5  ;;  %v593_v40 = vperm.slane %v565_v12, %v1355_v44 }
 0x25b   :  { %v601_v34 = vsel %vm431_vm5, %v586_v52, %v600_v42 }
 0x25c   :  { %v602_v15 = vsel %vm433_vm6, %v589_v14, %v601_v34 }
 0x25f   :  { %v559_v43 = vpop.permute.xlu1 %558 }
 0x260   :  { %v590_v57 = vperm.slane %v559_v43, %v1355_v44  ;;  %v571_v0 = vpop.permute.xlu0 %570 }
 0x261   :  { %v574_v41 = vpop.permute.xlu2 %573  ;;  %v596_v46 = vperm.slane %v571_v0, %v1355_v44 }
 0x262   :  { %v592_v33 = vsel %vm404_vm2, %v591_v3, %v590_v57  ;;  %v597_v6 = vperm.slane %v574_v41, %v1362_v47 }
 0x263   :  { %v603_v11 = vsel %vm435_vm7, %v592_v33, %v602_v15 }
 0x264   :  { %v598_v36 = vsel %vm404_vm2, %v597_v6, %v596_v46 }
 0x267   :  { %v568_v13 = vpop.permute.xlu1 %567 }
 0x268   :  { %v594_v45 = vperm.slane %v568_v13, %v1362_v47 }
 0x26a   :  { %v595_v30 = vsel %vm404_vm2, %v594_v45, %v593_v40 }
 0x26b   :  { %v604_v56 = vsel %vm437_vm8, %v595_v30, %v603_v11 }
 0x26c   :  { %v605_v31 = vsel %vm439_vm9, %v598_v36, %v604_v56 }
 0x26d   :  { %v607_v43 = vsel %vm442_vm10, %v605_v31, 0.0 }
 0x26e   :  { %608 = vadd.xlane.f32.xlu1 %v607_v43 }
 0x2e1   :  { %v609_v37 = vpop.xlane.xlu1 %608 }
 0x2e2   :  { %1004 = vrcp.f32 %v609_v37 }
 0x2e8   :  { %v1005_v12 = vpop.eup %1004 }
 0x2e9   :  { %v617_v48 = vperm.slane %v1005_v12, 5  ;;  %v612_v53 = vperm.slane %v1005_v12, 0  ;;  %v613_v57 = vperm.slane %v1005_v12, 1  ;;  %v614_v63 = vperm.slane %v1005_v12, 2 }
 0x2ea   :  { %v616_v42 = vperm.slane %v1005_v12, 4  ;;  %v618_v3 = vperm.slane %v1005_v12, 6  ;;  %v619_v34 = vperm.slane %v1005_v12, 7 }
 0x2eb   :  { %v638_v5 = vmul.f32 %v1469_v55, %v617_v48  ;;  %v629_v38 = vmul.f32 %v1434_v7, %v612_v53  ;;  %v628_v52 = vmul.f32 %v1437_v50, %v612_v53  ;;  %v631_v58 = vmul.f32 %v1450_v39, %v613_v57 }
 0x2ec   :  { %v630_v59 = vmul.f32 %v1432_v4, %v613_v57  ;;  %v633_v0 = vmul.f32 %v1445_v29, %v614_v63  ;;  %v632_v41 = vmul.f32 %v1463_v51, %v614_v63  ;;  %v615_v7 = vperm.slane %v1005_v12, 3 }
 0x2ed   :  { %696 = vperm.xlu1 %937, %v638_v5   ;;  %651 = vperm.xlu2 %935, %v629_v38   ;;  %v637_v39 = vmul.f32 %v1482_v32, %v616_v42  ;;  %v636_v4 = vmul.f32 %v1447_v35, %v616_v42  ;;  %v640_v29 = vmul.f32 %v1486_v1, %v618_v3 }
 0x2ee   :  { %646 = vperm.xlu0 %936, %v628_v52   ;;  %v635_v50 = vmul.f32 %v1458_v49, %v615_v7  ;;  %v634_v55 = vmul.f32 %v1474_v61, %v615_v7  ;;  %v639_v51 = vmul.f32 %v1460_v54, %v617_v48  ;;  %v642_v49 = vmul.f32 %v1471_v60, %v619_v34 }
 0x2ef   :  { %v641_v61 = vmul.f32 %v1479_v62, %v618_v3  ;;  %v643_v32 = vmul.f32 %v1489_v2, %v619_v34 }
 0x2f5   :  { %661 = vperm.xlu2 %935, %v631_v58  }
 0x2f6   :  { %656 = vperm.xlu0 %936, %v630_v59  }
 0x2fd   :  { %671 = vperm.xlu2 %935, %v633_v0  }
 0x2fe   :  { %666 = vperm.xlu0 %936, %v632_v41  }
 0x305   :  { %681 = vperm.xlu2 %935, %v635_v50  }
 0x306   :  { %676 = vperm.xlu0 %936, %v634_v55  }
 0x30d   :  { %691 = vperm.xlu2 %935, %v637_v39  }
 0x30e   :  { %686 = vperm.xlu0 %936, %v636_v4  }
 0x315   :  { %706 = vperm.xlu2 %935, %v640_v29  }
 0x316   :  { %701 = vperm.xlu0 %936, %v639_v51  }
 0x31d   :  { %716 = vperm.xlu2 %935, %v642_v49  }
 0x31e   :  { %711 = vperm.xlu0 %936, %v641_v61  }
 0x326   :  { %721 = vperm.xlu0 %936, %v643_v32  }
 0x347   :  { %v652_v35 = vpop.permute.xlu2 %651 }
 0x348   :  { %v725_v62 = vmul.f32 %v652_v35, %v1221_v8  ;;  %v813_v39 = vperm.slane %v652_v35, %v1362_v47 }
 0x34a   :  { %v741_v11 = vsel %vm141_vm0, %v725_v62, 0.0 }
 0x34f   :  { %v662_v46 = vpop.permute.xlu2 %661 }
 0x350   :  { %v727_v15 = vmul.f32 %v662_v46, %v1245_v19  ;;  %v816_v4 = vperm.slane %v662_v46, %v1362_v47 }
 0x357   :  { %v1540_v13 = vpop.permute.xlu2 %671 }
 0x358   :  { %v729_v31 = vmul.f32 %v1540_v13, %v1273_v26  ;;  %v819_v29 = vperm.slane %v1540_v13, %v1362_v47 }
 0x35a   :  { %v759_v5 = vsel %vm141_vm0, %v729_v31, 0.0 }
 0x35f   :  { %v1544_v54 = vpop.permute.xlu2 %681  ;;  %v1566_v43 = vpop.permute.xlu1 %696 }
 0x360   :  { %v647_v33 = vpop.permute.xlu0 %646  ;;  %v731_v37 = vmul.f32 %v1544_v54, %v1235_v17  ;;  %v734_v53 = vmul.f32 %v1566_v43, %v1275_v27  ;;  %v827_v51 = vperm.slane %v1566_v43, %v1355_v44  ;;  %v822_v61 = vperm.slane %v1544_v54, %v1362_v47 }
 0x361   :  { %v724_v60 = vmul.f32 %v647_v33, %v1247_v20  ;;  %v812_v55 = vperm.slane %v647_v33, %v1355_v44 }
 0x362   :  { %v768_v52 = vsel %vm141_vm0, %v731_v37, 0.0  ;;  %v785_v27 = vsel %vm141_vm0, %v734_v53, 0.0 }
 0x363   :  { %v740_v2 = vsel %vm141_vm0, %v724_v60, 0.0  ;;  %v814_v46 = vsel %vm404_vm2, %v813_v39, %v812_v55 }
 0x364   :  { %v742_v36 = vadd.f32 %v741_v11, %v740_v2 }
 0x366   :  { %v743_v48 = vrot.slane %v742_v36, 4 }
 0x367   :  { %v1552_v45 = vpop.permute.xlu2 %691 }
 0x368   :  { %v657_v6 = vpop.permute.xlu0 %656  ;;  %v744_v59 = vadd.f32 %v743_v48, %v742_v36 }
 0x369   :  { %v726_v40 = vmul.f32 %v657_v6, %v1233_v16  ;;  %v750_v16 = vsel %vm141_vm0, %v727_v15, 0.0  ;;  %v815_v41 = vperm.slane %v657_v6, %v1355_v44  ;;  %v825_v6 = vperm.slane %v1552_v45, %v1362_v47 }
 0x36a   :  { %v745_v34 = vrot.slane %v744_v59, 2 }
 0x36b   :  { %v749_v56 = vsel %vm141_vm0, %v726_v40, 0.0  ;;  %v817_v32 = vsel %vm404_vm2, %v816_v4, %v815_v41 }
 0x36c   :  { %v751_v12 = vadd.f32 %v750_v16, %v749_v56  ;;  %v1608_v11 = vadd.f32 %v745_v34, %v744_v59 }
 0x36e   :  { %v752_v17 = vrot.slane %v751_v12, 4 }
 0x36f   :  { %v1581_v57 = vpop.permute.xlu2 %706 }
 0x370   :  { %v1542_v1 = vpop.permute.xlu0 %666  ;;  %v753_v3 = vadd.f32 %v752_v17, %v751_v12  ;;  %v736_v35 = vmul.f32 %v1581_v57, %v1237_v18  ;;  %v836_v18 = vsel %vm427_vm3, %v817_v32, %v814_v46  ;;  %v830_v37 = vperm.slane %v1581_v57, %v1355_v44 }
 0x371   :  { %v728_v20 = vmul.f32 %v1542_v1, %v1261_v23  ;;  %v733_v23 = vmul.f32 %v1552_v45, %v1263_v24  ;;  %v818_v13 = vperm.slane %v1542_v1, %v1355_v44 }
 0x372   :  { %v754_v40 = vrot.slane %v753_v3, 2  ;;  %v794_v56 = vsel %vm141_vm0, %v736_v35, 0.0 }
 0x373   :  { %v777_v63 = vsel %vm141_vm0, %v733_v23, 0.0 }
 0x377   :  { %v717_v1 = vpop.permute.xlu2 %716 }
 0x378   :  { %v1546_v14 = vpop.permute.xlu0 %676  ;;  %v738_v48 = vmul.f32 %v717_v1, %v1265_v25 }
 0x379   :  { %v730_v8 = vmul.f32 %v1546_v14, %v1223_v9  ;;  %v758_v9 = vsel %vm141_vm0, %v728_v20, 0.0  ;;  %v821_v54 = vperm.slane %v1546_v14, %v1355_v44  ;;  %v820_v14 = vsel %vm404_vm2, %v819_v29, %v818_v13 }
 0x37a   :  { %v760_v58 = vadd.f32 %v759_v5, %v758_v9  ;;  %v833_v5 = vperm.slane %v717_v1, %v1355_v44 }
 0x37b   :  { %v767_v26 = vsel %vm141_vm0, %v730_v8, 0.0 }
 0x37c   :  { %v769_v0 = vadd.f32 %v768_v52, %v767_v26  ;;  %v837_v26 = vsel %vm429_vm4, %v820_v14, %v836_v18 }
 0x37e   :  { %v770_v49 = vrot.slane %v769_v0, 4 }
 0x380   :  { %v1555_v30 = vpop.permute.xlu0 %686  ;;  %v771_v36 = vadd.f32 %v770_v49, %v769_v0  ;;  %v803_v0 = vsel %vm141_vm0, %v738_v48, 0.0 }
 0x381   :  { %v732_v19 = vmul.f32 %v1555_v30, %v1249_v21  ;;  %v824_v45 = vperm.slane %v1555_v30, %v1355_v44  ;;  %v823_v30 = vsel %vm404_vm2, %v822_v61, %v821_v54 }
 0x382   :  { %v772_v23 = vrot.slane %v771_v36, 2  ;;  %v838_v52 = vsel %vm431_vm5, %v823_v30, %v837_v26 }
 0x383   :  { %v776_v38 = vsel %vm141_vm0, %v732_v19, 0.0  ;;  %v755_v19 = vadd.f32 %v754_v40, %v753_v3  ;;  %v826_v9 = vsel %vm404_vm2, %v825_v6, %v824_v45 }
 0x384   :  { %v778_v7 = vadd.f32 %v777_v63, %v776_v38  ;;  %v839_v59 = vsel %vm433_vm6, %v826_v9, %v838_v52 }
 0x385   :  { %v756_v4 = vrot.slane %v755_v19, 1 }
 0x386   :  { %v779_v33 = vrot.slane %v778_v7, 4 }
 0x387   :  { %v757_v32 = vadd.f32 %v756_v4, %v755_v19 }
 0x388   :  { %v702_v21 = vpop.permute.xlu0 %701  ;;  %v780_v20 = vadd.f32 %v779_v33, %v778_v7 }
 0x389   :  { %v735_v24 = vmul.f32 %v702_v21, %v1225_v10  ;;  %v761_v10 = vrot.slane %v760_v58, 4  ;;  %v828_v8 = vperm.slane %v702_v21, %v1362_v47 }
 0x38a   :  { %v781_v38 = vrot.slane %v780_v20, 2 }
 0x38b   :  { %v786_v50 = vsel %vm141_vm0, %v735_v24, 0.0  ;;  %v762_v2 = vadd.f32 %v761_v10, %v760_v58  ;;  %v829_v21 = vsel %vm404_vm2, %v828_v8, %v827_v51  ;;  %v747_v51 = vrot.slane %v1608_v11, 1 }
 0x38c   :  { %v787_v42 = vadd.f32 %v786_v50, %v785_v27  ;;  %v773_v27 = vadd.f32 %v772_v23, %v771_v36  ;;  %v840_v41 = vsel %vm435_vm7, %v829_v21, %v839_v59  ;;  %v782_v50 = vadd.f32 %v781_v38, %v780_v20 }
 0x38d   :  { %v763_v12 = vrot.slane %v762_v2, 2  ;;  %v748_v13 = vadd.f32 %v747_v51, %v1608_v11 }
 0x38e   :  { %v788_v60 = vrot.slane %v787_v42, 4  ;;  %v774_v34 = vrot.slane %v773_v27, 1  ;;  %v783_v61 = vrot.slane %v782_v50, 1 }
 0x38f   :  { %v764_v25 = vadd.f32 %v763_v12, %v762_v2  ;;  %v853_v2 = vsel %vm427_vm3, %v757_v32, %v748_v13 }
 0x390   :  { %v712_v62 = vpop.permute.xlu0 %711  ;;  %v789_v31 = vadd.f32 %v788_v60, %v787_v42  ;;  %v775_v60 = vadd.f32 %v774_v34, %v773_v27  ;;  %v784_v40 = vadd.f32 %v783_v61, %v782_v50 }
 0x391   :  { %v737_v15 = vmul.f32 %v712_v62, %v1251_v22  ;;  %v831_v43 = vperm.slane %v712_v62, %v1362_v47  ;;  %v765_v10 = vrot.slane %v764_v25, 1 }
 0x392   :  { %v790_v17 = vrot.slane %v789_v31, 2 }
 0x393   :  { %v795_v16 = vsel %vm141_vm0, %v737_v15, 0.0  ;;  %v832_v58 = vsel %vm404_vm2, %v831_v43, %v830_v37  ;;  %v766_v46 = vadd.f32 %v765_v10, %v764_v25 }
 0x394   :  { %v796_v22 = vadd.f32 %v795_v16, %v794_v56  ;;  %v841_v39 = vsel %vm437_vm8, %v832_v58, %v840_v41  ;;  %v791_v3 = vadd.f32 %v790_v17, %v789_v31 }
 0x395   :  { %v854_v18 = vsel %vm429_vm4, %v766_v46, %v853_v2 }
 0x396   :  { %v797_v53 = vrot.slane %v796_v22, 4  ;;  %v792_v35 = vrot.slane %v791_v3, 1  ;;  %v855_v56 = vsel %vm431_vm5, %v775_v60, %v854_v18 }
 0x397   :  { %v856_v11 = vsel %vm433_vm6, %v784_v40, %v855_v56 }
 0x398   :  { %v798_v57 = vadd.f32 %v797_v53, %v796_v22  ;;  %v722_v24 = vpop.permute.xlu0 %721  ;;  %v793_v54 = vadd.f32 %v792_v35, %v791_v3 }
 0x399   :  { %v739_v44 = vmul.f32 %v722_v24, %v1277_v28  ;;  %v834_v63 = vperm.slane %v722_v24, %v1362_v47 }
 0x39a   :  { %v799_v7 = vrot.slane %v798_v57, 2  ;;  %v857_v20 = vsel %vm435_vm7, %v793_v54, %v856_v11 }
 0x39b   :  { %v804_v55 = vsel %vm141_vm0, %v739_v44, 0.0  ;;  %v835_v42 = vsel %vm404_vm2, %v834_v63, %v833_v5 }
 0x39c   :  { %v805_v28 = vadd.f32 %v804_v55, %v803_v0  ;;  %v842_v47 = vsel %vm439_vm9, %v835_v42, %v841_v39  ;;  %v800_v29 = vadd.f32 %v799_v7, %v798_v57 }
 0x39d   :  { %844 = vst.msk [vmem:[#allocation11] sm:$0xff] %vm442_vm10, %v842_v47 }
 0x39e   :  { %v806_v49 = vrot.slane %v805_v28, 4  ;;  %883 = dma.vmem_to_hbm [thread:$0]  %s879_s22, 128, %s881_s25, [#allocation12]   ;;  %v801_v6 = vrot.slane %v800_v29, 1 }
 0x3a0   :  { %v807_v33 = vadd.f32 %v806_v49, %v805_v28  ;;  %v802_v36 = vadd.f32 %v801_v6, %v800_v29 }
 0x3a2   :  { %v808_v62 = vrot.slane %v807_v33, 2  ;;  %v858_v8 = vsel %vm437_vm8, %v802_v36, %v857_v20 }
 0x3a4   :  { %v809_v15 = vadd.f32 %v808_v62, %v807_v33 }
 0x3a6   :  { %v810_v45 = vrot.slane %v809_v15, 1 }
 0x3a8   :  { %v811_v1 = vadd.f32 %v810_v45, %v809_v15 }
 0x3aa   :  { %v859_v16 = vsel %vm439_vm9, %v811_v1, %v858_v8 }
 0x3ab   :  { %861 = vst.msk [vmem:[#allocation10] sm:$0xff] %vm141_vm0, %v859_v16 }
 0x3ac   :  { %872 = dma.vmem_to_hbm [thread:$0]  %s868_s26, 128, %s870_s29, [#allocation4]  }
 0x3ad   :  { %1156 = dma.done.wait [#allocation4], 128  }
 0x3ae   :  { %1157 = vsyncadd [#allocation4], 4294967168 }
 0x3af   :  { %1158 = dma.done.wait [#allocation12], 128  }
 0x3b0   :  { %1159 = vsyncadd [#allocation12], 4294967168 }
 0x3b1   :  { %892 = vsyncpa [#allocation3], 1 }
 0x3b2   :  { %893 = vsyncpa [#allocation6], 1 }
 0x3b3   :  { %894 = vsyncpa [#allocation9], 1 }
 0x3b4   :  { %895 = vsyncpa [#allocation4], 1 }
 0x3b5   :  { %896 = vsyncpa [#allocation12], 1 }

</bundles_post_ra>
